<compile_context>
chip_gen: v6e
topology: v6e:2x2x1
jax: 0.10.0
libtpu: 0.0.40
codegen_flags: <defaults>
</compile_context>

<pallas_src>
import jax
import jax.numpy as jnp
from jax.experimental import pallas as pl
from jax.experimental.pallas import tpu as pltpu

_LANE = 128                              # TPU vreg lane width
_LANE_CANDIDATES = (2048, 1024, 512, 256, 128)
_SINGLE_BLOCK_MAX_BYTES = 1 << 20        # <= 1 MiB: one grid-less VMEM block
_TARGET_BLOCK_BYTES = 4 << 20            # ~4 MiB blocks in the tiled path
_MIN_GRID_STEPS = 4                      # >= 4 steps so v7x megacore shards work


def _double_kernel(x_ref, o_ref):
    # b + b (detach is a value no-op in the forward pass).
    x = x_ref[...]
    o_ref[...] = x + x


def _sublane_multiple(dtype) -> int:
    # f32 -> 8 sublanes per vreg; sub-32-bit dtypes pack along sublanes
    # (bf16 -> 16, int8/fp8 -> 32).
    itemsize = jnp.dtype(dtype).itemsize
    return max(8, 32 // max(itemsize, 1))


def _pick_lanes(n: int, sub: int) -> int:
    """Widest lane count that divides n and still leaves >= `sub` rows.

    Returns 0 if n is not even a multiple of 128 (ragged: caller pads a tail).
    """
    for lanes in _LANE_CANDIDATES:                      # 2048, ..., 128
        if n % lanes == 0 and n // lanes >= sub:
            return lanes
    return _LANE if n % _LANE == 0 else 0


def _detach_add_2d(x2d: jax.Array) -> jax.Array:
    """Runs o = x + x on a lane-dense 2D view (rows, lanes), lanes % 128 == 0."""
    rows, lanes = x2d.shape
    itemsize = jnp.dtype(x2d.dtype).itemsize
    nbytes = rows * lanes * itemsize
    sub = _sublane_multiple(x2d.dtype)

    if nbytes <= _SINGLE_BLOCK_MAX_BYTES:
        # Whole array as a single grid-less VMEM block: no per-step overhead.
        return pl.pallas_call(
            _double_kernel,
            out_shape=jax.ShapeDtypeStruct((rows, lanes), x2d.dtype),
            in_specs=[pl.BlockSpec((rows, lanes), lambda: (0, 0),
                                   memory_space=pltpu.MemorySpace.VMEM)],
            out_specs=pl.BlockSpec((rows, lanes), lambda: (0, 0),
                                   memory_space=pltpu.MemorySpace.VMEM),
        )(x2d)

    # Tiled path: 1-D parallel grid over rows, no row padding (edge block is
    # masked by Pallas), block_rows capped so the grid has >= _MIN_GRID_STEPS
    # steps (v7x megacore) and block bytes stay around _TARGET_BLOCK_BYTES.
    target_rows = max(sub,
                      (_TARGET_BLOCK_BYTES // (lanes * itemsize)) // sub * sub)
    quarter_rows = pl.cdiv(pl.cdiv(rows, _MIN_GRID_STEPS), sub) * sub
    block_rows = max(sub, min(target_rows, quarter_rows))

    return pl.pallas_call(
        _double_kernel,
        out_shape=jax.ShapeDtypeStruct((rows, lanes), x2d.dtype),
        grid=(pl.cdiv(rows, block_rows),),
        in_specs=[pl.BlockSpec((block_rows, lanes), lambda i: (i, 0),
                               memory_space=pltpu.MemorySpace.VMEM)],
        out_specs=pl.BlockSpec((block_rows, lanes), lambda i: (i, 0),
                               memory_space=pltpu.MemorySpace.VMEM),
        compiler_params=pltpu.CompilerParams(
            dimension_semantics=("parallel",),      # megacore sharding on v7x
            vmem_limit_bytes=32 * 1024 * 1024,      # 4 bufs x <=4 MiB; v5e default is 16 MiB
        ),
        # With donated inputs, input_output_aliases={0: 0} would cut peak HBM
        # footprint (not bandwidth): read N + write N either way.
    )(x2d)


@jax.jit
def detach_model_forward(a: jax.Array) -> jax.Array:
    # detach(): identity on values, stops gradients.
    b = jax.lax.stop_gradient(a)

    n = b.size
    sub = _sublane_multiple(b.dtype)
    flat = b.reshape(n)                                   # free reshape (contiguous)

    lanes = _pick_lanes(n, sub)
    if lanes:
        # Common case: no padding, no output slice — pure reshape plumbing.
        out2d = _detach_add_2d(flat.reshape(n // lanes, lanes))
        return out2d.reshape(b.shape)

    # Ragged element count (n % 128 != 0): pad only the sub-128 tail.
    # TODO(synk): for very large ragged tensors this still materializes one
    # extra HBM copy of the input; split main/tail if that ever matters.
    n_pad = pl.cdiv(n, _LANE) * _LANE
    flat = jnp.pad(flat, (0, n_pad - n))
    lanes = _pick_lanes(n_pad, sub)
    out2d = _detach_add_2d(flat.reshape(n_pad // lanes, lanes))
    return out2d.reshape(-1)[:n].reshape(b.shape)


if __name__ == "__main__":
    # Small shape from the PyTorch test module: dense (B, C, H, W) tensor.
    x = jax.random.normal(jax.random.PRNGKey(0), (2, 4, 16, 16), dtype=jnp.float32)
    y = detach_model_forward(x)
    jax.block_until_ready(y)
    ref = x + x
    assert y.shape == ref.shape and y.dtype == ref.dtype
    assert jnp.array_equal(y, ref)

    # Ragged element count: exercises the tail-pad / unpad path.
    x2 = jax.random.normal(jax.random.PRNGKey(0), (3, 5, 17, 19), dtype=jnp.float32)
    y2 = detach_model_forward(x2)
    jax.block_until_ready(y2)
    assert jnp.array_equal(y2, x2 + x2)

    # Larger tensor (4 MiB) exercises the tiled "parallel"-grid path
    # (wide lanes chosen from the shape, >= 4 grid steps, masked edge block).
    x3 = jax.random.normal(jax.random.PRNGKey(0), (4, 16, 128, 128), dtype=jnp.float32)
    y3 = detach_model_forward(x3)
    jax.block_until_ready(y3)
    assert jnp.array_equal(y3, x3 + x3)

    print("KERNEL_OK")
</pallas_src>

<mosaic_0001>
module attributes {stable_mosaic.version = 11 : i64} {
  func.func @_double_kernel(%arg0: memref<8x256xf32, #tpu.memory_space<vmem>>, %arg1: memref<8x256xf32, #tpu.memory_space<vmem>>) attributes {dimension_semantics = [], scalar_prefetch = 0 : i64, scratch_operands = 0 : i64, tpu.core_type = #tpu.core_type<tc>} {
    %c0 = arith.constant 0 : index
    %c0_0 = arith.constant 0 : index
    %0 = vector.load %arg0[%c0, %c0_0] : memref<8x256xf32, #tpu.memory_space<vmem>>, vector<8x256xf32>
    %1 = arith.addf %0, %0 : vector<8x256xf32>
    %c0_1 = arith.constant 0 : index
    %c0_2 = arith.constant 0 : index
    %2 = vector.load %arg1[%c0_1, %c0_2] : memref<8x256xf32, #tpu.memory_space<vmem>>, vector<8x256xf32>
    tpu.vector_store %arg1[%c0_1, %c0_2], %1 {strides = array<i32>} : memref<8x256xf32, #tpu.memory_space<vmem>>, vector<8x256xf32>,
    return
  }
}

</mosaic_0001>

<bundles_post_ra>
// kernel: detach_model_forward.1
= control target key start
LH: loop header
LB: loop body
LE: loop exit
PB: predicated region body
PF: predicated region fallthrough
CT: control target
= control target key end

     0   :  { %s40_s0 = inlined_call_operand.vmem [shape: f32[8,256], index: 0, kind: input, shape index: {}]   ;;  %s41_s1 = inlined_call_operand.vmem [shape: f32[8,256], index: 1, kind: output, shape index: {}]  }
   0x1   :  { %v8_v0 = vld [vmem:[%s40_s0] sm:$0xff]  ;;  %v9_v1 = vld [vmem:[%s40_s0 + $0x8] sm:$0xff] }
   0x2   :  { %v10_v2 = vadd.f32 %v8_v0, %v8_v0  ;;  %v11_v3 = vadd.f32 %v9_v1, %v9_v1 }
   0x4   :  { %12 = vst [vmem:[%s41_s1] sm:$0xff] %v10_v2  ;;  %13 = vst [vmem:[%s41_s1 + $0x8] sm:$0xff] %v11_v3 }

</bundles_post_ra>
